<compile_context>
chip_gen: v7x
topology: tpu7x:2x2x1
jax: 0.10.0
libtpu: 0.0.40
codegen_flags: <defaults>
</compile_context>

<pallas_src>
import numpy as np
import jax
import jax.numpy as jnp
from jax.experimental import pallas as pl
from jax.experimental.pallas import tpu as pltpu

BN_EPS = 1e-5  # PyTorch BatchNorm1d default eps


# ----------------------------------------------------------------------------
# Fused kernel: conv1+BN1+ReLU+pool -> conv2+BN2+ReLU+pool -> flatten -> FC
# ----------------------------------------------------------------------------
def _cnn_fused_kernel(xq_ref, selx_ref, p1_ref, b1_ref,
                      w2cat_ref, s2eo_ref, b2_ref, g_ref, bfc_ref, out_ref):
    f32 = jnp.float32
    dot = lambda a, b: jnp.dot(a, b, preferred_element_type=f32)

    B = out_ref.shape[0]
    xq = xq_ref[...]                                    # (B*16, 28) packed input

    # ---- stage 1: conv1 (BN folded), even & odd pool branches in one chain.
    # selection matmul -> shifted packed-row window; p1 columns: [even | odd].
    z = dot(dot(selx_ref[0], xq), p1_ref[0])            # peeled first shift
    z = z + dot(dot(selx_ref[1], xq), p1_ref[1])
    z = z + dot(dot(selx_ref[2], xq), p1_ref[2])        # (B*15, 32)
    # even/odd max via lane slices (no MXU), then bias + ReLU.
    h1 = jnp.maximum(jnp.maximum(z[:, :16], z[:, 16:32]) + b1_ref[...], 0.0)

    # ---- stage 2: conv2 (BN folded) + ReLU + MaxPool(2).
    pk = dot(h1, w2cat_ref[...])                        # (B*15, 96): 3 taps x 32 ch
    yeo = dot(s2eo_ref[0], pk[:, 0:32])                 # merged even|odd gather
    yeo = yeo + dot(s2eo_ref[1], pk[:, 32:64])
    yeo = yeo + dot(s2eo_ref[2], pk[:, 64:96])          # (8B, 32)
    nb4 = 4 * B
    h2 = jnp.maximum(jnp.maximum(yeo[:nb4], yeo[nb4:]) + b2_ref[...], 0.0)  # (4B, 32)

    # ---- FC: rows are ordered u*B + b, so position-select is a sublane slice.
    acc = dot(h2[0 * B:1 * B], g_ref[0])                # (B, 256), peeled
    acc = acc + dot(h2[1 * B:2 * B], g_ref[1])
    acc = acc + dot(h2[2 * B:3 * B], g_ref[2])
    acc = acc + dot(h2[3 * B:4 * B], g_ref[3])
    out_ref[...] = acc + bfc_ref[...]                   # lane-dense 256-wide store


def _full_specs(args):
    # Whole-array blocks (full dims satisfy the (8,128) block rule).
    return [pl.BlockSpec(a.shape, lambda i, n=a.ndim: (0,) * n) for a in args]


# ----------------------------------------------------------------------------
# One-time (outside jit) parameter packing: BN folding, weight pre-transpose,
# selection matrices (pad folded in), FC row permutation.
# ----------------------------------------------------------------------------
def prepare_constants(params, batch):
    f32 = np.float32

    # Fold BatchNorm (inference, running stats) into conv weights/bias.
    s1 = np.asarray(params["g1"], f32) / np.sqrt(np.asarray(params["v1"], f32) + BN_EPS)
    w1 = np.asarray(params["w1"], f32) * s1[:, None, None]             # (16,7,7)
    b1 = (np.asarray(params["b1"], f32) - np.asarray(params["m1"], f32)) * s1 \
        + np.asarray(params["be1"], f32)
    s2 = np.asarray(params["g2"], f32) / np.sqrt(np.asarray(params["v2"], f32) + BN_EPS)
    w2 = np.asarray(params["w2"], f32) * s2[:, None, None]             # (32,16,3)
    b2 = (np.asarray(params["b2"], f32) - np.asarray(params["m2"], f32)) * s2 \
        + np.asarray(params["be2"], f32)

    # ---- stage 1 packing ---------------------------------------------------
    # Input is packed 4 positions/row (space-to-depth, NO padding): packed row
    # g of batch b holds original positions 4g..4g+3 (7 channels -> 28 lanes).
    # Pooled position u needs original positions 4u-1..4u+7, i.e. packed rows
    # u-1, u, u+1 (shift si = 0,1,2 -> row u+si-1).  The conv's left zero-pad
    # is folded in: the u-1 row for u=0 is an all-zero selection row, and only
    # the even-branch k=0 tap lives in that shift.
    p1 = np.zeros((3, 28, 32), f32)         # cols 0..15 even branch, 16..31 odd
    for si in range(3):
        for slot in range(4):
            for ci in range(7):
                r = slot * 7 + ci
                ke = 4 * si + slot - 3                  # even-branch tap index
                if 0 <= ke <= 6:
                    p1[si, r, :16] = w1[:, ci, ke]
                ko = 4 * si + slot - 5                  # odd-branch tap index
                if 0 <= ko <= 6:
                    p1[si, r, 16:] = w1[:, ci, ko]

    selx = np.zeros((3, batch * 15, batch * 16), f32)
    for si in range(3):
        for b in range(batch):
            for u in range(15):
                gidx = u + si - 1
                if gidx >= 0:                           # gidx == -1 => zero row (pad)
                    selx[si, b * 15 + u, b * 16 + gidx] = 1.0

    # ---- stage 2 packing ---------------------------------------------------
    # All 3 conv2 taps fused into one (16, 96) weight matrix; tap kk occupies
    # lanes 32*kk..32*kk+31.
    w2cat = np.zeros((16, 96), f32)
    for kk in range(3):
        w2cat[:, kk * 32:(kk + 1) * 32] = w2[:, :, kk].T

    # Merged even/odd gather: rows 0..4B-1 even conv positions, 4B..8B-1 odd.
    # Zero rows encode the conv2 zero padding.  Output rows ordered u*B + b.
    s2eo = np.zeros((3, 8 * batch, 15 * batch), f32)
    for kk in range(3):
        for b in range(batch):
            for u in range(4):
                r = u * batch + b
                je = 4 * u + kk - 1                     # conv pos 2u
                jo = 4 * u + kk + 1                     # conv pos 2u+1
                if 0 <= je < 15:
                    s2eo[kk, r, b * 15 + je] = 1.0
                if 0 <= jo < 15:
                    s2eo[kk, 4 * batch + r, b * 15 + jo] = 1.0

    # ---- FC ----------------------------------------------------------------
    # PyTorch channel-major flatten (idx = c*4 + u) absorbed into the weight
    # permutation: g[u][c, o] = Wfc[o, c*4 + u].
    wfc = np.asarray(params["wfc"], f32)                               # (256, 128)
    g = np.zeros((4, 32, 256), f32)
    for u in range(4):
        g[u] = wfc[:, u::4].T

    consts = dict(
        selx=selx, p1=p1, b1=b1.reshape(1, 16),
        w2cat=w2cat, s2eo=s2eo, b2=b2.reshape(1, 32),
        g=g, bfc=np.asarray(params["bfc"], f32).reshape(1, 256),
    )
    return jax.tree_util.tree_map(jnp.asarray, consts)


# ----------------------------------------------------------------------------
# Forward wrapper: one free reshape (space-to-depth), one pallas_call.
# ----------------------------------------------------------------------------
@jax.jit
def cnn_forward(x, consts):
    b, l, c = x.shape
    assert l == 64 and c == 7, "kernel packing is specialized to input_length=64, 7 channels"
    # Free row-major reinterpretation: (B, 64, 7) -> (B*16, 28); conv padding
    # is folded into selx/p1, so no jnp.pad HLO copy before the kernel.
    xq = x.reshape(b * 16, 28).astype(jnp.float32)

    args = (xq, consts["selx"], consts["p1"], consts["b1"],
            consts["w2cat"], consts["s2eo"], consts["b2"],
            consts["g"], consts["bfc"])

    bytes_accessed = sum(int(np.prod(a.shape)) * 4 for a in args) + b * 256 * 4
    cost = pl.CostEstimate(flops=330_000 * b, transcendentals=0,
                           bytes_accessed=bytes_accessed)

    return pl.pallas_call(
        _cnn_fused_kernel,
        out_shape=jax.ShapeDtypeStruct((b, 256), jnp.float32),
        grid=(1,),
        in_specs=_full_specs(args),
        out_specs=pl.BlockSpec((b, 256), lambda i: (0, 0)),
        compiler_params=pltpu.CompilerParams(dimension_semantics=("arbitrary",)),
        cost_estimate=cost,
    )(*args)


# ----------------------------------------------------------------------------
# Parameters + pure-JAX reference (inference-mode BN) for validation.
# ----------------------------------------------------------------------------
def init_params(key):
    ks = jax.random.split(key, 14)
    u = lambda k, shape, s=0.1: s * jax.random.uniform(k, shape, jnp.float32, -1.0, 1.0)
    return dict(
        w1=u(ks[0], (16, 7, 7)), b1=u(ks[1], (16,)),
        g1=1.0 + u(ks[2], (16,)), be1=u(ks[3], (16,)),
        m1=u(ks[4], (16,)), v1=jax.random.uniform(ks[5], (16,), jnp.float32, 0.5, 1.5),
        w2=u(ks[6], (32, 16, 3)), b2=u(ks[7], (32,)),
        g2=1.0 + u(ks[8], (32,)), be2=u(ks[9], (32,)),
        m2=u(ks[10], (32,)), v2=jax.random.uniform(ks[11], (32,), jnp.float32, 0.5, 1.5),
        wfc=u(ks[12], (256, 128)), bfc=u(ks[13], (256,)),
    )


def reference_forward(x, p):
    """Pure-JAX replica of the PyTorch forward (inference-mode BN)."""
    prec = jax.lax.Precision.HIGHEST
    xc = jnp.transpose(x, (0, 2, 1))                               # (B, 7, L)

    def conv1d(h, w, bias, stride, pad):
        y = jax.lax.conv_general_dilated(h, w, (stride,), [(pad, pad)],
                                         dimension_numbers=("NCH", "OIH", "NCH"),
                                         precision=prec)
        return y + bias[None, :, None]

    def bn(h, g, be, m, v):
        return (h - m[None, :, None]) * g[None, :, None] * jax.lax.rsqrt(
            v[None, :, None] + BN_EPS) + be[None, :, None]

    def pool(h):
        bb, c, l = h.shape
        return jnp.max(h.reshape(bb, c, l // 2, 2), axis=-1)

    h = pool(jax.nn.relu(bn(conv1d(xc, p["w1"], p["b1"], 2, 1),
                            p["g1"], p["be1"], p["m1"], p["v1"])))
    h = pool(jax.nn.relu(bn(conv1d(h, p["w2"], p["b2"], 2, 1),
                            p["g2"], p["be2"], p["m2"], p["v2"])))
    h = h.reshape(h.shape[0], -1)
    return jnp.dot(h, p["wfc"].T, precision=prec) + p["bfc"]


if __name__ == "__main__":
    key = jax.random.PRNGKey(0)
    kx, kp = jax.random.split(key)
    params = init_params(kp)

    # input: (batch=2, seq_len=64, features=7); PyTorch forward permutes to (B, 7, 64)
    x = jax.random.normal(kx, (2, 64, 7), jnp.float32)

    consts = prepare_constants(params, batch=x.shape[0])

    out = cnn_forward(x, consts)
    jax.block_until_ready(out)
    assert out.shape == (2, 256), out.shape

    ref = reference_forward(x, params)
    np.testing.assert_allclose(np.asarray(out), np.asarray(ref), rtol=2e-3, atol=2e-3)

    print("KERNEL_OK")
</pallas_src>

<mosaic_0001>
module attributes {stable_mosaic.version = 11 : i64} {
  func.func @_cnn_fused_kernel(%arg0: i32, %arg1: memref<32x28xf32, #tpu.memory_space<vmem>>, %arg2: memref<3x30x32xf32, #tpu.memory_space<vmem>>, %arg3: memref<3x28x32xf32, #tpu.memory_space<vmem>>, %arg4: memref<1x16xf32, #tpu.memory_space<vmem>>, %arg5: memref<16x96xf32, #tpu.memory_space<vmem>>, %arg6: memref<3x16x30xf32, #tpu.memory_space<vmem>>, %arg7: memref<1x32xf32, #tpu.memory_space<vmem>>, %arg8: memref<4x32x256xf32, #tpu.memory_space<vmem>>, %arg9: memref<1x256xf32, #tpu.memory_space<vmem>>, %arg10: memref<2x256xf32, #tpu.memory_space<vmem>>) attributes {dimension_semantics = [#tpu.dimension_semantics<arbitrary>], iteration_bounds = array<i64: 1>, scalar_prefetch = 0 : i64, scratch_operands = 0 : i64, tpu.core_type = #tpu.core_type<tc>, window_params = [{pipeline_mode = #tpu.pipeline_mode<synchronous>, transform_indices = @transform_0, window_bounds = array<i64: 32, 28>}, {pipeline_mode = #tpu.pipeline_mode<synchronous>, transform_indices = @transform_1, window_bounds = array<i64: 3, 30, 32>}, {pipeline_mode = #tpu.pipeline_mode<synchronous>, transform_indices = @transform_2, window_bounds = array<i64: 3, 28, 32>}, {pipeline_mode = #tpu.pipeline_mode<synchronous>, transform_indices = @transform_3, window_bounds = array<i64: 1, 16>}, {pipeline_mode = #tpu.pipeline_mode<synchronous>, transform_indices = @transform_4, window_bounds = array<i64: 16, 96>}, {pipeline_mode = #tpu.pipeline_mode<synchronous>, transform_indices = @transform_5, window_bounds = array<i64: 3, 16, 30>}, {pipeline_mode = #tpu.pipeline_mode<synchronous>, transform_indices = @transform_6, window_bounds = array<i64: 1, 32>}, {pipeline_mode = #tpu.pipeline_mode<synchronous>, transform_indices = @transform_7, window_bounds = array<i64: 4, 32, 256>}, {pipeline_mode = #tpu.pipeline_mode<synchronous>, transform_indices = @transform_8, window_bounds = array<i64: 1, 256>}, {pipeline_mode = #tpu.pipeline_mode<synchronous>, transform_indices = @transform_9, window_bounds = array<i64: 2, 256>}]} {
    %c0 = arith.constant 0 : index
    %c0_0 = arith.constant 0 : index
    %0 = vector.load %arg1[%c0, %c0_0] : memref<32x28xf32, #tpu.memory_space<vmem>>, vector<32x28xf32>
    %c0_1 = arith.constant 0 : index
    %c0_2 = arith.constant 0 : index
    %c0_3 = arith.constant 0 : index
    %1 = vector.load %arg2[%c0_1, %c0_2, %c0_3] : memref<3x30x32xf32, #tpu.memory_space<vmem>>, vector<1x30x32xf32>
    %2 = vector.shape_cast %1 : vector<1x30x32xf32> to vector<30x32xf32>
    %cst = arith.constant dense<0.000000e+00> : vector<30x28xf32>
    %3 = tpu.matmul %2, %0, %cst {dimension_numbers = #tpu.dot_dimension_numbers<[1], [0], [0], [1], [0, 0, 1, 1], [], []>} : vector<30x32xf32>, vector<32x28xf32>, vector<30x28xf32> -> vector<30x28xf32>
    %c0_4 = arith.constant 0 : index
    %c0_5 = arith.constant 0 : index
    %c0_6 = arith.constant 0 : index
    %4 = vector.load %arg3[%c0_4, %c0_5, %c0_6] : memref<3x28x32xf32, #tpu.memory_space<vmem>>, vector<1x28x32xf32>
    %5 = vector.shape_cast %4 : vector<1x28x32xf32> to vector<28x32xf32>
    %cst_7 = arith.constant dense<0.000000e+00> : vector<30x32xf32>
    %6 = tpu.matmul %3, %5, %cst_7 {dimension_numbers = #tpu.dot_dimension_numbers<[1], [0], [0], [1], [0, 0, 1, 1], [], []>} : vector<30x28xf32>, vector<28x32xf32>, vector<30x32xf32> -> vector<30x32xf32>
    %c1 = arith.constant 1 : index
    %c0_8 = arith.constant 0 : index
    %c0_9 = arith.constant 0 : index
    %7 = vector.load %arg2[%c1, %c0_8, %c0_9] : memref<3x30x32xf32, #tpu.memory_space<vmem>>, vector<1x30x32xf32>
    %8 = vector.shape_cast %7 : vector<1x30x32xf32> to vector<30x32xf32>
    %cst_10 = arith.constant dense<0.000000e+00> : vector<30x28xf32>
    %9 = tpu.matmul %8, %0, %cst_10 {dimension_numbers = #tpu.dot_dimension_numbers<[1], [0], [0], [1], [0, 0, 1, 1], [], []>} : vector<30x32xf32>, vector<32x28xf32>, vector<30x28xf32> -> vector<30x28xf32>
    %c1_11 = arith.constant 1 : index
    %c0_12 = arith.constant 0 : index
    %c0_13 = arith.constant 0 : index
    %10 = vector.load %arg3[%c1_11, %c0_12, %c0_13] : memref<3x28x32xf32, #tpu.memory_space<vmem>>, vector<1x28x32xf32>
    %11 = vector.shape_cast %10 : vector<1x28x32xf32> to vector<28x32xf32>
    %cst_14 = arith.constant dense<0.000000e+00> : vector<30x32xf32>
    %12 = tpu.matmul %9, %11, %cst_14 {dimension_numbers = #tpu.dot_dimension_numbers<[1], [0], [0], [1], [0, 0, 1, 1], [], []>} : vector<30x28xf32>, vector<28x32xf32>, vector<30x32xf32> -> vector<30x32xf32>
    %13 = arith.addf %6, %12 : vector<30x32xf32>
    %c2 = arith.constant 2 : index
    %c0_15 = arith.constant 0 : index
    %c0_16 = arith.constant 0 : index
    %14 = vector.load %arg2[%c2, %c0_15, %c0_16] : memref<3x30x32xf32, #tpu.memory_space<vmem>>, vector<1x30x32xf32>
    %15 = vector.shape_cast %14 : vector<1x30x32xf32> to vector<30x32xf32>
    %cst_17 = arith.constant dense<0.000000e+00> : vector<30x28xf32>
    %16 = tpu.matmul %15, %0, %cst_17 {dimension_numbers = #tpu.dot_dimension_numbers<[1], [0], [0], [1], [0, 0, 1, 1], [], []>} : vector<30x32xf32>, vector<32x28xf32>, vector<30x28xf32> -> vector<30x28xf32>
    %c2_18 = arith.constant 2 : index
    %c0_19 = arith.constant 0 : index
    %c0_20 = arith.constant 0 : index
    %17 = vector.load %arg3[%c2_18, %c0_19, %c0_20] : memref<3x28x32xf32, #tpu.memory_space<vmem>>, vector<1x28x32xf32>
    %18 = vector.shape_cast %17 : vector<1x28x32xf32> to vector<28x32xf32>
    %cst_21 = arith.constant dense<0.000000e+00> : vector<30x32xf32>
    %19 = tpu.matmul %16, %18, %cst_21 {dimension_numbers = #tpu.dot_dimension_numbers<[1], [0], [0], [1], [0, 0, 1, 1], [], []>} : vector<30x28xf32>, vector<28x32xf32>, vector<30x32xf32> -> vector<30x32xf32>
    %20 = arith.addf %13, %19 : vector<30x32xf32>
    %21 = vector.extract_strided_slice %20 {offsets = [0, 0], sizes = [30, 16], strides = [1, 1]} : vector<30x32xf32> to vector<30x16xf32>
    %22 = vector.extract_strided_slice %20 {offsets = [0, 16], sizes = [30, 16], strides = [1, 1]} : vector<30x32xf32> to vector<30x16xf32>
    %23 = arith.maximumf %21, %22 : vector<30x16xf32>
    %c0_22 = arith.constant 0 : index
    %c0_23 = arith.constant 0 : index
    %24 = vector.load %arg4[%c0_22, %c0_23] : memref<1x16xf32, #tpu.memory_space<vmem>>, vector<1x16xf32>
    %25 = vector.broadcast %24 : vector<1x16xf32> to vector<30x16xf32>
    %26 = arith.addf %23, %25 : vector<30x16xf32>
    %cst_24 = arith.constant 0.000000e+00 : f32
    %27 = vector.broadcast %cst_24 : f32 to vector<30x16xf32>
    %28 = arith.maximumf %26, %27 : vector<30x16xf32>
    %c0_25 = arith.constant 0 : index
    %c0_26 = arith.constant 0 : index
    %29 = vector.load %arg5[%c0_25, %c0_26] : memref<16x96xf32, #tpu.memory_space<vmem>>, vector<16x96xf32>
    %cst_27 = arith.constant dense<0.000000e+00> : vector<30x96xf32>
    %30 = tpu.matmul %28, %29, %cst_27 {dimension_numbers = #tpu.dot_dimension_numbers<[1], [0], [0], [1], [0, 0, 1, 1], [], []>} : vector<30x16xf32>, vector<16x96xf32>, vector<30x96xf32> -> vector<30x96xf32>
    %c0_28 = arith.constant 0 : index
    %c0_29 = arith.constant 0 : index
    %c0_30 = arith.constant 0 : index
    %31 = vector.load %arg6[%c0_28, %c0_29, %c0_30] : memref<3x16x30xf32, #tpu.memory_space<vmem>>, vector<1x16x30xf32>
    %32 = vector.shape_cast %31 : vector<1x16x30xf32> to vector<16x30xf32>
    %33 = vector.extract_strided_slice %30 {offsets = [0, 0], sizes = [30, 32], strides = [1, 1]} : vector<30x96xf32> to vector<30x32xf32>
    %cst_31 = arith.constant dense<0.000000e+00> : vector<16x32xf32>
    %34 = tpu.matmul %32, %33, %cst_31 {dimension_numbers = #tpu.dot_dimension_numbers<[1], [0], [0], [1], [0, 0, 1, 1], [], []>} : vector<16x30xf32>, vector<30x32xf32>, vector<16x32xf32> -> vector<16x32xf32>
    %c1_32 = arith.constant 1 : index
    %c0_33 = arith.constant 0 : index
    %c0_34 = arith.constant 0 : index
    %35 = vector.load %arg6[%c1_32, %c0_33, %c0_34] : memref<3x16x30xf32, #tpu.memory_space<vmem>>, vector<1x16x30xf32>
    %36 = vector.shape_cast %35 : vector<1x16x30xf32> to vector<16x30xf32>
    %37 = vector.extract_strided_slice %30 {offsets = [0, 32], sizes = [30, 32], strides = [1, 1]} : vector<30x96xf32> to vector<30x32xf32>
    %cst_35 = arith.constant dense<0.000000e+00> : vector<16x32xf32>
    %38 = tpu.matmul %36, %37, %cst_35 {dimension_numbers = #tpu.dot_dimension_numbers<[1], [0], [0], [1], [0, 0, 1, 1], [], []>} : vector<16x30xf32>, vector<30x32xf32>, vector<16x32xf32> -> vector<16x32xf32>
    %39 = arith.addf %34, %38 : vector<16x32xf32>
    %c2_36 = arith.constant 2 : index
    %c0_37 = arith.constant 0 : index
    %c0_38 = arith.constant 0 : index
    %40 = vector.load %arg6[%c2_36, %c0_37, %c0_38] : memref<3x16x30xf32, #tpu.memory_space<vmem>>, vector<1x16x30xf32>
    %41 = vector.shape_cast %40 : vector<1x16x30xf32> to vector<16x30xf32>
    %42 = vector.extract_strided_slice %30 {offsets = [0, 64], sizes = [30, 32], strides = [1, 1]} : vector<30x96xf32> to vector<30x32xf32>
    %cst_39 = arith.constant dense<0.000000e+00> : vector<16x32xf32>
    %43 = tpu.matmul %41, %42, %cst_39 {dimension_numbers = #tpu.dot_dimension_numbers<[1], [0], [0], [1], [0, 0, 1, 1], [], []>} : vector<16x30xf32>, vector<30x32xf32>, vector<16x32xf32> -> vector<16x32xf32>
    %44 = arith.addf %39, %43 : vector<16x32xf32>
    %45 = vector.extract_strided_slice %44 {offsets = [0, 0], sizes = [8, 32], strides = [1, 1]} : vector<16x32xf32> to vector<8x32xf32>
    %46 = vector.extract_strided_slice %44 {offsets = [8, 0], sizes = [8, 32], strides = [1, 1]} : vector<16x32xf32> to vector<8x32xf32>
    %47 = arith.maximumf %45, %46 : vector<8x32xf32>
    %c0_40 = arith.constant 0 : index
    %c0_41 = arith.constant 0 : index
    %48 = vector.load %arg7[%c0_40, %c0_41] : memref<1x32xf32, #tpu.memory_space<vmem>>, vector<1x32xf32>
    %49 = vector.broadcast %48 : vector<1x32xf32> to vector<8x32xf32>
    %50 = arith.addf %47, %49 : vector<8x32xf32>
    %cst_42 = arith.constant 0.000000e+00 : f32
    %51 = vector.broadcast %cst_42 : f32 to vector<8x32xf32>
    %52 = arith.maximumf %50, %51 : vector<8x32xf32>
    %53 = vector.extract_strided_slice %52 {offsets = [0, 0], sizes = [2, 32], strides = [1, 1]} : vector<8x32xf32> to vector<2x32xf32>
    %c0_43 = arith.constant 0 : index
    %c0_44 = arith.constant 0 : index
    %c0_45 = arith.constant 0 : index
    %54 = vector.load %arg8[%c0_43, %c0_44, %c0_45] : memref<4x32x256xf32, #tpu.memory_space<vmem>>, vector<1x32x256xf32>
    %55 = vector.shape_cast %54 : vector<1x32x256xf32> to vector<32x256xf32>
    %cst_46 = arith.constant dense<0.000000e+00> : vector<2x256xf32>
    %56 = tpu.matmul %53, %55, %cst_46 {dimension_numbers = #tpu.dot_dimension_numbers<[1], [0], [0], [1], [0, 0, 1, 1], [], []>} : vector<2x32xf32>, vector<32x256xf32>, vector<2x256xf32> -> vector<2x256xf32>
    %57 = vector.extract_strided_slice %52 {offsets = [2, 0], sizes = [2, 32], strides = [1, 1]} : vector<8x32xf32> to vector<2x32xf32>
    %c1_47 = arith.constant 1 : index
    %c0_48 = arith.constant 0 : index
    %c0_49 = arith.constant 0 : index
    %58 = vector.load %arg8[%c1_47, %c0_48, %c0_49] : memref<4x32x256xf32, #tpu.memory_space<vmem>>, vector<1x32x256xf32>
    %59 = vector.shape_cast %58 : vector<1x32x256xf32> to vector<32x256xf32>
    %cst_50 = arith.constant dense<0.000000e+00> : vector<2x256xf32>
    %60 = tpu.matmul %57, %59, %cst_50 {dimension_numbers = #tpu.dot_dimension_numbers<[1], [0], [0], [1], [0, 0, 1, 1], [], []>} : vector<2x32xf32>, vector<32x256xf32>, vector<2x256xf32> -> vector<2x256xf32>
    %61 = arith.addf %56, %60 : vector<2x256xf32>
    %62 = vector.extract_strided_slice %52 {offsets = [4, 0], sizes = [2, 32], strides = [1, 1]} : vector<8x32xf32> to vector<2x32xf32>
    %c2_51 = arith.constant 2 : index
    %c0_52 = arith.constant 0 : index
    %c0_53 = arith.constant 0 : index
    %63 = vector.load %arg8[%c2_51, %c0_52, %c0_53] : memref<4x32x256xf32, #tpu.memory_space<vmem>>, vector<1x32x256xf32>
    %64 = vector.shape_cast %63 : vector<1x32x256xf32> to vector<32x256xf32>
    %cst_54 = arith.constant dense<0.000000e+00> : vector<2x256xf32>
    %65 = tpu.matmul %62, %64, %cst_54 {dimension_numbers = #tpu.dot_dimension_numbers<[1], [0], [0], [1], [0, 0, 1, 1], [], []>} : vector<2x32xf32>, vector<32x256xf32>, vector<2x256xf32> -> vector<2x256xf32>
    %66 = arith.addf %61, %65 : vector<2x256xf32>
    %67 = vector.extract_strided_slice %52 {offsets = [6, 0], sizes = [2, 32], strides = [1, 1]} : vector<8x32xf32> to vector<2x32xf32>
    %c3 = arith.constant 3 : index
    %c0_55 = arith.constant 0 : index
    %c0_56 = arith.constant 0 : index
    %68 = vector.load %arg8[%c3, %c0_55, %c0_56] : memref<4x32x256xf32, #tpu.memory_space<vmem>>, vector<1x32x256xf32>
    %69 = vector.shape_cast %68 : vector<1x32x256xf32> to vector<32x256xf32>
    %cst_57 = arith.constant dense<0.000000e+00> : vector<2x256xf32>
    %70 = tpu.matmul %67, %69, %cst_57 {dimension_numbers = #tpu.dot_dimension_numbers<[1], [0], [0], [1], [0, 0, 1, 1], [], []>} : vector<2x32xf32>, vector<32x256xf32>, vector<2x256xf32> -> vector<2x256xf32>
    %71 = arith.addf %66, %70 : vector<2x256xf32>
    %c0_58 = arith.constant 0 : index
    %c0_59 = arith.constant 0 : index
    %72 = vector.load %arg9[%c0_58, %c0_59] : memref<1x256xf32, #tpu.memory_space<vmem>>, vector<1x256xf32>
    %73 = vector.broadcast %72 : vector<1x256xf32> to vector<2x256xf32>
    %74 = arith.addf %71, %73 : vector<2x256xf32>
    %c0_60 = arith.constant 0 : index
    %c0_61 = arith.constant 0 : index
    %75 = vector.load %arg10[%c0_60, %c0_61] : memref<2x256xf32, #tpu.memory_space<vmem>>, vector<2x256xf32>
    tpu.vector_store %arg10[%c0_60, %c0_61], %74 {strides = array<i32>} : memref<2x256xf32, #tpu.memory_space<vmem>>, vector<2x256xf32>,
    return
  }
  func.func @transform_0(%arg0: i32) -> (i32, i32) {
    %c0_i32 = arith.constant 0 : i32
    %c0_i32_0 = arith.constant 0 : i32
    %c0_i32_1 = arith.constant 0 : i32
    return %c0_i32, %c0_i32_0 : i32, i32
  }
  func.func @transform_1(%arg0: i32) -> (i32, i32, i32) {
    %c0_i32 = arith.constant 0 : i32
    %c0_i32_0 = arith.constant 0 : i32
    %c0_i32_1 = arith.constant 0 : i32
    %c0_i32_2 = arith.constant 0 : i32
    return %c0_i32, %c0_i32_0, %c0_i32_1 : i32, i32, i32
  }
  func.func @transform_2(%arg0: i32) -> (i32, i32, i32) {
    %c0_i32 = arith.constant 0 : i32
    %c0_i32_0 = arith.constant 0 : i32
    %c0_i32_1 = arith.constant 0 : i32
    %c0_i32_2 = arith.constant 0 : i32
    return %c0_i32, %c0_i32_0, %c0_i32_1 : i32, i32, i32
  }
  func.func @transform_3(%arg0: i32) -> (i32, i32) {
    %c0_i32 = arith.constant 0 : i32
    %c0_i32_0 = arith.constant 0 : i32
    %c0_i32_1 = arith.constant 0 : i32
    return %c0_i32, %c0_i32_0 : i32, i32
  }
  func.func @transform_4(%arg0: i32) -> (i32, i32) {
    %c0_i32 = arith.constant 0 : i32
    %c0_i32_0 = arith.constant 0 : i32
    %c0_i32_1 = arith.constant 0 : i32
    return %c0_i32, %c0_i32_0 : i32, i32
  }
  func.func @transform_5(%arg0: i32) -> (i32, i32, i32) {
    %c0_i32 = arith.constant 0 : i32
    %c0_i32_0 = arith.constant 0 : i32
    %c0_i32_1 = arith.constant 0 : i32
    %c0_i32_2 = arith.constant 0 : i32
    return %c0_i32, %c0_i32_0, %c0_i32_1 : i32, i32, i32
  }
  func.func @transform_6(%arg0: i32) -> (i32, i32) {
    %c0_i32 = arith.constant 0 : i32
    %c0_i32_0 = arith.constant 0 : i32
    %c0_i32_1 = arith.constant 0 : i32
    return %c0_i32, %c0_i32_0 : i32, i32
  }
  func.func @transform_7(%arg0: i32) -> (i32, i32, i32) {
    %c0_i32 = arith.constant 0 : i32
    %c0_i32_0 = arith.constant 0 : i32
    %c0_i32_1 = arith.constant 0 : i32
    %c0_i32_2 = arith.constant 0 : i32
    return %c0_i32, %c0_i32_0, %c0_i32_1 : i32, i32, i32
  }
  func.func @transform_8(%arg0: i32) -> (i32, i32) {
    %c0_i32 = arith.constant 0 : i32
    %c0_i32_0 = arith.constant 0 : i32
    %c0_i32_1 = arith.constant 0 : i32
    return %c0_i32, %c0_i32_0 : i32, i32
  }
  func.func @transform_9(%arg0: i32) -> (i32, i32) {
    %c0_i32 = arith.constant 0 : i32
    %c0_i32_0 = arith.constant 0 : i32
    %c0_i32_1 = arith.constant 0 : i32
    return %c0_i32, %c0_i32_0 : i32, i32
  }
}

</mosaic_0001>

<bundles_post_ra>
// kernel: cnn_forward.1
= control target key start
LH: loop header
LB: loop body
LE: loop exit
PB: predicated region body
PF: predicated region fallthrough
CT: control target
= control target key end

     0   :  { %14 = vsyncpa [#allocation3], 0  ;;  %s2469_s0 = inlined_call_operand.vmem [shape: f32[32,28], index: 0, kind: input, shape index: {}]   ;;  %s2470_s1 = inlined_call_operand.hbm [shape: f32[3,30,32], index: 1, kind: input, shape index: {}]   ;;  %s2471_s2 = inlined_call_operand.hbm [shape: f32[3,28,32], index: 2, kind: input, shape index: {}]   ;;  %s2472_s3 = inlined_call_operand.hbm [shape: f32[1,16], index: 3, kind: input, shape index: {}]   ;;  %s2473_s4 = inlined_call_operand.vmem [shape: f32[16,96], index: 4, kind: input, shape index: {}]   ;;  %s2474_s5 = inlined_call_operand.vmem [shape: f32[3,16,30], index: 5, kind: input, shape index: {}]   ;;  %s2475_s6 = inlined_call_operand.hbm [shape: f32[1,32], index: 6, kind: input, shape index: {}]   ;;  %s2476_s7 = inlined_call_operand.vmem [shape: f32[4,32,256], index: 7, kind: input, shape index: {}]   ;;  %s2477_s8 = inlined_call_operand.hbm [shape: f32[1,256], index: 8, kind: input, shape index: {}]   ;;  %s2478_s9 = inlined_call_operand.hbm [shape: f32[2,256], index: 9, kind: output, shape index: {}]  }
   0x1   :  { %15 = vsyncpa [#allocation6], 0 }
   0x2   :  { %16 = vsyncpa [#allocation9], 0 }
   0x3   :  { %17 = vsyncpa [#allocation4], 0  ;;  %s2120_s30 = smov [#allocation5]   ;;  %s2121_s11 = smov [#allocation8]  }
   0x4   :  { %s37_s10 = sshll.u32 %s2120_s30, 4  ;;  %s64_s12 = sshll.u32 %s2121_s11, 4  ;;  %s38_s10 = int_to_ptr.vmem [resolvable:$true] %s37_s10  ;;  %s2183_s12 = int_to_ptr.vmem [resolvable:$true] %s64_s12 }
   0x5   :  { %s1980_s15 = scalar_lea.hbm %s2471_s2, 1536 }
   0x6   :  { %p1981_p0 = scmp.ne.s32.totalorder %s2471_s2, %s1980_s15  ;;  %p1984_p1 = scmp.lt.u32.totalorder %s1980_s15, %s2471_s2 }
   0x8   :  { %p1986_p2 = pnand %p1984_p1, %p1981_p0 }
   0xa   :  { %1989 = shalt.err (!%p1986_p2)
}
   0xb   :  { %s1990_s20 = scalar_lea.vmem %s38_s10, 1536  ;;  %p1995_p4 = scmp.lt.s32.totalorder %s38_s10, %s38_s10 }
   0xc   :  { %p1991_p3 = scmp.ne.s32.totalorder %s38_s10, %s1990_s20  ;;  %p1996_p5 = scmp.lt.s32.totalorder %s1990_s20, %s1990_s20 }
   0xe   :  { %p1997_p6 = por %p1996_p5, %p1995_p4 }
  0x10   :  { %p1998_p7 = pnand %p1997_p6, %p1991_p3 }
  0x12   :  { %2001 = shalt.err (!%p1998_p7)
}
  0x13   :  { %s2122_s21 = smov 128   ;;  %s2123_s22 = smov 8  }
  0x14   :  { %43 = dma.hbm_to_vmem [thread:$0]  %s2471_s2, 1536, %s38_s10, [#allocation6], %s2122_s21, %s2122_s21, %s2123_s22  }
  0x15   :  { %s2002_s27 = scalar_lea.hbm %s2475_s6, 16 }
  0x16   :  { %p2003_p8 = scmp.ne.s32.totalorder %s2475_s6, %s2002_s27  ;;  %p2006_p9 = scmp.lt.u32.totalorder %s2002_s27, %s2475_s6 }
  0x18   :  { %p2008_p10 = pnand %p2006_p9, %p2003_p8 }
  0x1a   :  { %2011 = shalt.err (!%p2008_p10)
}
  0x1b   :  { %s2012_s13 = scalar_lea.vmem %s2183_s12, 16  ;;  %s2016_s2 = scalar_lea.vmem %s2183_s12, 32 }
  0x1c   :  { %p2013_p11 = scmp.ne.s32.totalorder %s2183_s12, %s2012_s13  ;;  %p2017_p12 = scmp.lt.s32.totalorder %s2183_s12, %s2183_s12 }
  0x1d   :  { %p2018_p13 = scmp.lt.s32.totalorder %s2016_s2, %s2012_s13 }
  0x1f   :  { %p2019_p0 = por %p2018_p13, %p2017_p12 }
  0x21   :  { %p2020_p1 = pnand %p2019_p0, %p2013_p11 }
  0x23   :  { %2023 = shalt.err (!%p2020_p1)
}
  0x24   :  { %67 = dma.hbm_to_vmem [thread:$0]  %s2475_s6, 16, %s2183_s12, [#allocation9]  }
  0x25   :  { %s2124_s15 = smov [#allocation2]   ;;  %s2125_s17 = smov [#allocation7]  }
  0x26   :  { %s25_s16 = sshll.u32 %s2124_s15, 4  ;;  %s50_s18 = sshll.u32 %s2125_s17, 4  ;;  %s26_s16 = int_to_ptr.vmem [resolvable:$true] %s25_s16  ;;  %s51_s18 = int_to_ptr.vmem [resolvable:$true] %s50_s18 }
  0x27   :  { %s2024_s23 = scalar_lea.hbm %s2470_s1, 1536 }
  0x28   :  { %p2025_p2 = scmp.ne.s32.totalorder %s2470_s1, %s2024_s23  ;;  %p2028_p3 = scmp.lt.u32.totalorder %s2024_s23, %s2470_s1 }
  0x2a   :  { %p2030_p4 = pnand %p2028_p3, %p2025_p2 }
  0x2c   :  { %2033 = shalt.err (!%p2030_p4)
}
  0x2d   :  { %s2034_s6 = scalar_lea.vmem %s26_s16, 1536  ;;  %p2039_p6 = scmp.lt.s32.totalorder %s26_s16, %s26_s16 }
  0x2e   :  { %p2035_p5 = scmp.ne.s32.totalorder %s26_s16, %s2034_s6  ;;  %p2040_p7 = scmp.lt.s32.totalorder %s2034_s6, %s2034_s6 }
  0x30   :  { %p2041_p8 = por %p2040_p7, %p2039_p6 }
  0x32   :  { %p2042_p9 = pnand %p2041_p8, %p2035_p5 }
  0x34   :  { %2045 = shalt.err (!%p2042_p9)
}
  0x35   :  { %31 = dma.hbm_to_vmem [thread:$0]  %s2470_s1, 1536, %s26_s16, [#allocation3], %s2122_s21, %s2122_s21, %s2123_s22  }
  0x36   :  { %s2046_s11 = scalar_lea.hbm %s2472_s3, 16 }
  0x37   :  { %p2047_p10 = scmp.ne.s32.totalorder %s2472_s3, %s2046_s11  ;;  %p2050_p11 = scmp.lt.u32.totalorder %s2046_s11, %s2472_s3 }
  0x39   :  { %p2052_p12 = pnand %p2050_p11, %p2047_p10 }
  0x3b   :  { %2055 = shalt.err (!%p2052_p12)
}
  0x3c   :  { %s2056_s15 = scalar_lea.vmem %s51_s18, 16  ;;  %s2060_s17 = scalar_lea.vmem %s51_s18, 32 }
  0x3d   :  { %p2057_p13 = scmp.ne.s32.totalorder %s51_s18, %s2056_s15  ;;  %p2061_p0 = scmp.lt.s32.totalorder %s51_s18, %s51_s18 }
  0x3e   :  { %p2062_p1 = scmp.lt.s32.totalorder %s2060_s17, %s2056_s15 }
  0x40   :  { %p2063_p2 = por %p2062_p1, %p2061_p0 }
  0x42   :  { %p2064_p3 = pnand %p2063_p2, %p2057_p13 }
  0x44   :  { %2067 = shalt.err (!%p2064_p3)
}
  0x45   :  { %53 = dma.hbm_to_vmem [thread:$0]  %s2472_s3, 16, %s51_s18, [#allocation6]  }
  0x46   :  { %s2126_s22 = smov [#allocation10]   ;;  %s2068_s23 = scalar_lea.hbm %s2477_s8, 32 }
  0x47   :  { %s76_s16 = sshll.u32 %s2126_s22, 4  ;;  %p2069_p4 = scmp.ne.s32.totalorder %s2477_s8, %s2068_s23  ;;  %s77_s16 = int_to_ptr.vmem [resolvable:$true] %s76_s16 }
  0x48   :  { %p2072_p5 = scmp.lt.u32.totalorder %s2068_s23, %s2477_s8 }
  0x4a   :  { %p2074_p6 = pnand %p2072_p5, %p2069_p4 }
  0x4c   :  { %2077 = shalt.err (!%p2074_p6)
}
  0x4d   :  { %s2078_s6 = scalar_lea.vmem %s77_s16, 32  ;;  %p2083_p8 = scmp.lt.s32.totalorder %s77_s16, %s77_s16 }
  0x4e   :  { %p2079_p7 = scmp.ne.s32.totalorder %s77_s16, %s2078_s6  ;;  %p2084_p9 = scmp.lt.s32.totalorder %s2078_s6, %s2078_s6 }
  0x50   :  { %p2085_p10 = por %p2084_p9, %p2083_p8 }
  0x52   :  { %p2086_p11 = pnand %p2085_p10, %p2079_p7 }
  0x54   :  { %2089 = shalt.err (!%p2086_p11)
}
  0x55   :  { %79 = dma.hbm_to_vmem [thread:$0]  %s2477_s8, 32, %s77_s16, [#allocation9]  }
  0x56   :  { %2112 = dma.done.wait [#allocation3], 1536  }
  0x57   :  { %2113 = vsyncadd [#allocation3], 4294965760 }
  0x58   :  { %2114 = dma.done.wait [#allocation6], 1552  }
  0x59   :  { %2115 = vsyncadd [#allocation6], 4294965744 }
  0x5a   :  { %2116 = dma.done.wait [#allocation9], 48  }
  0x5b   :  { %2117 = vsyncadd [#allocation9], 4294967248  ;;  %vm103_vm0 = vcmask 261120   ;;  %v95_v0 = vld [vmem:[%s2469_s0] sm:$0xff]  ;;  %v96_v1 = vld [vmem:[%s2469_s0 + $0x8] sm:$0xff]  ;;  %vm325_vm1 = vcmask 1043456  }
  0x5c   :  { %v97_v2 = vld [vmem:[%s2469_s0 + $0x10] sm:$0xff]  ;;  %v1809_v3 = vpack.c.bf16 %v96_v1, %v95_v0  ;;  %v98_v4 = vld [vmem:[%s2469_s0 + $0x18] sm:$0xff]  ;;  %v101_v8 = vld [vmem:[#allocation2 + $0x10] sm:$0xff]  ;;  %vm2127_vm2 = vmmov 1   ;;  %vm312_vm4 = vcmask 228352   ;;  %s2128_s17 = smov 112  }
  0x5d   :  { %v99_v5 = vld [vmem:[#allocation2] sm:$0xff]  ;;  %v1813_v6 = vpack.c.bf16 %v98_v4, %v97_v2  ;;  %v100_v7 = vld [vmem:[#allocation2 + $0x8] sm:$0xff]  ;;  %v102_v9 = vld [vmem:[#allocation2 + $0x18] sm:$0x3f]  ;;  %vm762_vm5 = vcmask 130048   ;;  %vm880_vm6 = vcmask 244736  }
  0x5e   :  { %1690 = vmatprep.mubr.msk.f32.mxu1 %vm103_vm0, %v99_v5  ;;  %1810 = vmatprep.subr.bf16.mxu1 %v1809_v3  ;;  %v206_v10 = vld [vmem:[#allocation2 + $0x20] sm:$0xff]  ;;  %v207_v11 = vld [vmem:[#allocation2 + $0x28] sm:$0xff]  ;;  %v208_v12 = vld [vmem:[#allocation2 + $0x30] sm:$0xff]  ;;  %s2129_s21 = smov 96   ;;  %s2130_s22 = smov 64   ;;  %vm887_vm7 = vcmask 1045504  }
  0x5f   :  { %1812 = vmatpush3.bf16.msra.mxu1 %v1809_v3  ;;  %v209_v13 = vld [vmem:[#allocation2 + $0x38] sm:$0x3f]  ;;  %v515_v14 = vld [vmem:[#allocation2 + $0x40] sm:$0xff]  ;;  %v516_v15 = vld [vmem:[#allocation2 + $0x48] sm:$0xff] }
  0x60   :  { %1814 = vmatprep.subr.bf16.mxu1 %v1813_v6  ;;  %v517_v16 = vld [vmem:[#allocation2 + $0x50] sm:$0xff]  ;;  %v518_v17 = vld [vmem:[#allocation2 + $0x58] sm:$0x3f]  ;;  %v308_v18 = vld [vmem:[#allocation5 + $0x20] sm:$0xff] }
  0x61   :  { %v309_v19 = vld [vmem:[#allocation5 + $0x28] sm:$0xff]  ;;  %v310_v21 = vld [vmem:[#allocation5 + $0x30] sm:$0xff]  ;;  %v311_v22 = vld [vmem:[#allocation5 + $0x38] sm:$0xf] }
  0x62   :  { %v1825_v20 = vpack.c.bf16 %v309_v19, %v308_v18  ;;  %v1829_v23 = vpack.c.bf16 %v311_v22, %v310_v21  ;;  %vm2282_vm3 = vmpackc.low %vm325_vm1, %vm2127_vm2  ;;  %v201_v25 = vld [vmem:[#allocation5] sm:$0xff]  ;;  %v202_v26 = vld [vmem:[#allocation5 + $0x8] sm:$0xff] }
  0x63   :  { %1816 = vmatpush3.bf16.msra.mxu1 %v1813_v6  ;;  %v1835_v27 = vpack.c.bf16 %v202_v26, %v201_v25  ;;  %v203_v32 = vld [vmem:[#allocation5 + $0x10] sm:$0xff]  ;;  %v204_v33 = vld [vmem:[#allocation5 + $0x18] sm:$0xf]  ;;  %v617_v37 = vld [vmem:[#allocation5 + $0x40] sm:$0xff] }
  0x64   :  { %1818 = vmatprep.subr.bf16.mxu1 %v1809_v3  ;;  %1826 = vmatprep.subr.bf16.mxu0 %v1825_v20  ;;  %v1839_v36 = vpack.c.bf16 %v204_v33, %v203_v32  ;;  %v618_v38 = vld [vmem:[#allocation5 + $0x48] sm:$0xff]  ;;  %v619_v42 = vld [vmem:[#allocation5 + $0x50] sm:$0xff]  ;;  %v620_v43 = vld [vmem:[#allocation5 + $0x58] sm:$0xf] }
  0x65   :  { %1828 = vmatpush3.bf16.msra.mxu0 %v1825_v20  ;;  %v1853_v41 = vpack.c.bf16 %v618_v38, %v617_v37  ;;  %v1857_v45 = vpack.c.bf16 %v620_v43, %v619_v42  ;;  %v760_v49 = vld [vmem:[%s2473_s4] sm:$0xff]  ;;  %v761_v50 = vld [vmem:[%s2473_s4 + $0x8] sm:$0xff]  ;;  %v1562_v56 = vld [vmem:[#allocation7] ss:$0 sm:$0xff] }
  0x66   :  { %1691 = vmatmul.mubr.msk.f32.vlgmr.msra.gmra.mrb[0].mxu1 %vm103_vm0, %v100_v7  ;;  %1831 = vmatprep.subr.msk.bf16.mxu0 %vm2282_vm3, %v1829_v23  ;;  %v1863_v51 = vpack.c.bf16 %v761_v50, %v760_v49  ;;  %vm2321_vm8 = vmpackc.low %vm887_vm7, %vm2127_vm2  ;;  %v1575_v37 = vld [vmem:[%s2474_s5 + $0x20] sm:$0xff]  ;;  %v1587_v50 = vld [vmem:[%s2476_s7 + $0x70] sm:$0xff] }
  0x67   :  { %1820 = vmatpush3.bf16.msra.mxu1 %v1809_v3  ;;  %1693 = vmatprep.mubr.msk.f32.mxu1 %vm103_vm0, %v101_v8  ;;  %v1581_v43 = vld [vmem:[%s2476_s7 + $0x40] sm:$0xff]  ;;  %v1605_v25 = vld [vmem:[%s2476_s7 + $0xe8] sm:$0xff] }
  0x68   :  { %1822 = vmatprep.subr.bf16.mxu1 %v1813_v6  ;;  %v1585_v49 = vld [vmem:[%s2476_s7 + $0x60] sm:$0xff] }
  0x69   :  { %1834 = vmatpush3.bf16.msk.msra.mxu0 %vm2282_vm3, %v1829_v23 }
  0x6a   :  { %1694 = vmatmul.mubr.msk.f32.gmra.mrb[2].mxu1 %vm103_vm0, %v102_v9  ;;  %1836 = vmatprep.subr.bf16.mxu0 %v1835_v27 }
  0x6b   :  { %1824 = vmatpush3.bf16.msra.mxu1 %v1813_v6  ;;  %1704 = vmatprep.mubr.msk.f32.mxu1 %vm103_vm0, %v206_v10 }
  0x6c   :  { %1846 = vmatprep.subr.bf16.mxu1 %v1809_v3 }
  0x6e   :  { %1705 = vmatmul.mubr.msk.f32.vlgmr.msra.gmra.mrb[4].mxu1 %vm103_vm0, %v207_v11  ;;  %v1567_v11 = vld [vmem:[%s2474_s5 + $0x10] sm:$0xff] }
  0x6f   :  { %1707 = vmatprep.mubr.msk.f32.mxu1 %vm103_vm0, %v208_v12  ;;  %1848 = vmatpush3.bf16.msra.mxu1 %v1809_v3 }
  0x70   :  { %1850 = vmatprep.subr.bf16.mxu1 %v1813_v6 }
  0x72   :  { %1708 = vmatmul.mubr.msk.f32.gmra.mrb[6].mxu1 %vm103_vm0, %v209_v13 }
  0x73   :  { %1852 = vmatpush3.bf16.msra.mxu1 %v1813_v6  ;;  %1746 = vmatprep.mubr.msk.f32.mxu1 %vm103_vm0, %v515_v14 }
  0x74   :  { %1864 = vmatprep.subr.bf16.mxu1 %v1863_v51 }
  0x76   :  { %1747 = vmatmul.mubr.msk.f32.vlgmr.msra.gmra.mrb[8].mxu1 %vm103_vm0, %v516_v15 }
  0x77   :  { %1749 = vmatprep.mubr.msk.f32.mxu1 %vm103_vm0, %v517_v16  ;;  %1866 = vmatpush3.bf16.msra.mxu1 %v1863_v51  ;;  %v1903_v51 = vpack.c.bf16 %v1587_v50, %v1585_v49 }
  0x7a   :  { %1750 = vmatmul.mubr.msk.f32.gmra.mrb[10].mxu1 %vm103_vm0, %v518_v17 }
 0x139   :  { %v1692_v28 = vpop.f32.mrb[0].mxu1 }
 0x13a   :  { %v182_v29 = vpop.f32.mrb[1].mxu1 }
 0x13d   :  { %v1695_v30 = vpop.f32.mrb[2].mxu1 }
 0x13e   :  { %v192_v31 = vpop.f32.mrb[3].mxu1 }
 0x141   :  { %v1706_v34 = vpop.f32.mrb[4].mxu1 }
 0x142   :  { %v288_v35 = vpop.f32.mrb[5].mxu1 }
 0x143   :  { %1718 = vmatprep.mubr.msk.f32.mxu0 %vm312_vm4, %v288_v35 }
 0x144   :  { %1719 = vmatmul.mubr.msk.f32.vlgmr.msra.gmra.mrb[0].mxu0 %vm312_vm4, %v1706_v34 }
 0x145   :  { %v1709_v39 = vpop.f32.mrb[6].mxu1  ;;  %1838 = vmatpush3.bf16.msra.mxu0 %v1835_v27 }
 0x146   :  { %v298_v40 = vpop.f32.mrb[7].mxu1  ;;  %1841 = vmatprep.subr.msk.bf16.mxu0 %vm2282_vm3, %v1839_v36 }
 0x147   :  { %1721 = vmatprep.mubr.msk.f32.mxu0 %vm312_vm4, %v298_v40  ;;  %v1582_v40 = vld [vmem:[%s2476_s7 + $0x48] sm:$0xff] }
 0x148   :  { %1722 = vmatmul.mubr.msk.f32.gmra.mrb[2].mxu0 %vm312_vm4, %v1709_v39  ;;  %v1576_v39 = vld [vmem:[%s2474_s5 + $0x28] sm:$0xff] }
 0x149   :  { %1844 = vmatpush3.bf16.msk.msra.mxu0 %vm2282_vm3, %v1839_v36  ;;  %1732 = vmatprep.mubr.msk.f32.mxu0 %vm312_vm4, %v182_v29  ;;  %v1748_v44 = vpop.f32.mrb[8].mxu1  ;;  %v860_v29 = vld [vmem:[%s2474_s5] sm:$0xff]  ;;  %v861_v36 = vld [vmem:[%s2474_s5 + $0x8] sm:$0xff] }
 0x14a   :  { %1854 = vmatprep.subr.bf16.mxu0 %v1853_v41  ;;  %v597_v46 = vpop.f32.mrb[9].mxu1 }
 0x14c   :  { %1733 = vmatmul.mubr.msk.f32.vlgmr.msra.gmra.mrb[0].mxu0 %vm312_vm4, %v1692_v28  ;;  %v1568_v28 = vld [vmem:[%s2474_s5 + $0x18] sm:$0xff] }
 0x14d   :  { %1735 = vmatprep.mubr.msk.f32.mxu0 %vm312_vm4, %v192_v31  ;;  %1856 = vmatpush3.bf16.msra.mxu0 %v1853_v41  ;;  %v1751_v47 = vpop.f32.mrb[10].mxu1  ;;  %v1584_v41 = vld [vmem:[%s2476_s7 + $0x58] sm:$0xff] }
 0x14e   :  { %1859 = vmatprep.subr.msk.bf16.mxu0 %vm2282_vm3, %v1857_v45  ;;  %v607_v48 = vpop.f32.mrb[11].mxu1  ;;  %v1897_v42 = vpack.c.bf16 %v1584_v41, %v1582_v40 }
 0x150   :  { %1736 = vmatmul.mubr.msk.f32.gmra.mrb[2].mxu0 %vm312_vm4, %v1695_v30 }
 0x151   :  { %1862 = vmatpush3.bf16.msk.msra.mxu0 %vm2282_vm3, %v1857_v45  ;;  %1760 = vmatprep.mubr.msk.f32.mxu0 %vm312_vm4, %v597_v46  ;;  %v1586_v46 = vld [vmem:[%s2476_s7 + $0x68] sm:$0xff] }
 0x152   :  { %1898 = vmatprep.subr.bf16.mxu0 %v1897_v42 }
 0x154   :  { %1761 = vmatmul.mubr.msk.f32.vlgmr.msra.gmra.mrb[0].mxu0 %vm312_vm4, %v1748_v44  ;;  %v1583_v44 = vld [vmem:[%s2476_s7 + $0x50] sm:$0xff] }
 0x155   :  { %1763 = vmatprep.mubr.msk.f32.mxu0 %vm312_vm4, %v607_v48  ;;  %v1899_v45 = vpack.c.bf16 %v1583_v44, %v1581_v43 }
 0x157   :  { %1900 = vmatpush1.bf16.msra.mxu0 %v1899_v45 }
 0x158   :  { %1764 = vmatmul.mubr.msk.f32.gmra.mrb[2].mxu0 %vm312_vm4, %v1751_v47  ;;  %v1588_v47 = vld [vmem:[%s2476_s7 + $0x78] sm:$0xff] }
 0x159   :  { %v1901_v48 = vpack.c.bf16 %v1588_v47, %v1586_v46 }
 0x15b   :  { %1902 = vmatprep.subr.bf16.mxu0 %v1901_v48 }
 0x15c   :  { %1904 = vmatpush1.bf16.msra.mxu0 %v1903_v51 }
 0x227   :  { %v1762_v52 = vpop.f32.mrb[0].mxu0 }
 0x228   :  { %v702_v53 = vpop.f32.mrb[1].mxu0 }
 0x229   :  { %729 = vrot.lane.b32.xlu0 %v702_v53, %s2128_s17 }
 0x22b   :  { %v1765_v54 = vpop.f32.mrb[2].mxu0 }
 0x22c   :  { %v712_v55 = vpop.f32.mrb[3].mxu0 }
 0x22d   :  { %731 = vrot.lane.b32.xlu0 %v1762_v52, %s2128_s17  ;;  %733 = vrot.lane.b32.xlu1 %v712_v55, %s2128_s17 }
 0x231   :  { %735 = vrot.lane.b32.xlu1 %v1765_v54, %s2128_s17 }
 0x29b   :  { %v730_v57 = vpop.permute.xlu0 %729 }
 0x29c   :  { %v741_v58 = vmax.f32 %v702_v53, %v730_v57  ;;  %v1160_v53 = vld [vmem:[%s2476_s7 + $0x18] sm:$0xff] }
 0x29e   :  { %v752_v59 = vadd.f32 %v1562_v56, %v741_v58  ;;  %v1580_v58 = vld [vmem:[#allocation8] ss:$0 sm:$0xff] }
 0x29f   :  { %v732_v60 = vpop.permute.xlu0 %731  ;;  %v734_v61 = vpop.permute.xlu1 %733 }
 0x2a0   :  { %v756_v62 = vmax.f32 %v752_v59, 0.0  ;;  %v742_v63 = vmax.f32 %v1762_v52, %v732_v60  ;;  %v743_v0 = vmax.f32 %v712_v55, %v734_v61  ;;  %v1158_v52 = vld [vmem:[%s2476_s7 + $0x8] sm:$0xff]  ;;  %v2131_v55 = vmov 0.0   ;;  %v1157_v61 = vld [vmem:[%s2476_s7] sm:$0xff] }
 0x2a1   :  { %1242 = vmatprep.mubr.f32.mxu0 %v2131_v55 }
 0x2a2   :  { %v753_v1 = vadd.f32 %v1562_v56, %v742_v63  ;;  %v754_v2 = vadd.f32 %v1562_v56, %v743_v0  ;;  %1770 = vmatprep.mubr.msk.f32.mxu1 %vm762_vm5, %v756_v62  ;;  %v1159_v62 = vld [vmem:[%s2476_s7 + $0x10] sm:$0xff]  ;;  %v1162_v63 = vld [vmem:[%s2476_s7 + $0x28] sm:$0xff]  ;;  %v1164_v0 = vld [vmem:[%s2476_s7 + $0x38] sm:$0xff] }
 0x2a3   :  { %v736_v3 = vpop.permute.xlu1 %735 }
 0x2a4   :  { %v757_v4 = vmax.f32 %v753_v1, 0.0  ;;  %v758_v5 = vmax.f32 %v754_v2, 0.0  ;;  %v744_v6 = vmax.f32 %v1765_v54, %v736_v3  ;;  %v1905_v54 = vpack.c.bf16 %v1160_v53, %v1158_v52 }
 0x2a5   :  { %v1907_v2 = vpack.c.bf16 %v1159_v62, %v1157_v61 }
 0x2a6   :  { %v755_v7 = vadd.f32 %v1562_v56, %v744_v6  ;;  %1771 = vmatmul.mubr.msk.f32.vlgmr.msra.gmra.mrb[12].mxu1 %vm762_vm5, %v757_v4  ;;  %1906 = vmatprep.subr.bf16.mxu0 %v1905_v54  ;;  %v1909_v4 = vpack.c.bf16 %v1164_v0, %v1162_v63  ;;  %v1163_v6 = vld [vmem:[%s2476_s7 + $0x30] sm:$0xff] }
 0x2a7   :  { %1773 = vmatprep.mubr.msk.f32.mxu1 %vm762_vm5, %v758_v5  ;;  %v1161_v5 = vld [vmem:[%s2476_s7 + $0x20] sm:$0xff] }
 0x2a8   :  { %v759_v8 = vmax.f32 %v755_v7, 0.0  ;;  %v1592_v7 = vld [vmem:[%s2476_s7 + $0x88] sm:$0xff] }
 0x2aa   :  { %1774 = vmatmul.mubr.msk.f32.gmra.mrb[14].mxu1 %vm762_vm5, %v759_v8  ;;  %v1594_v8 = vld [vmem:[%s2476_s7 + $0x98] sm:$0xff] }
 0x2ab   :  { %1784 = vmatprep.mubr.msk.f32.mxu1 %vm880_vm6, %v1567_v11  ;;  %v1591_v11 = vld [vmem:[%s2476_s7 + $0x80] sm:$0xff] }
 0x379   :  { %v1772_v9 = vpop.f32.mrb[12].mxu1 }
 0x37a   :  { %v841_v10 = vpop.f32.mrb[13].mxu1 }
 0x37b   :  { %v1970_v12 = vpack.i.bf16 %v1772_v9, %v841_v10  ;;  %v1877_v13 = vpack.c.bf16 %v1772_v9, %v841_v10  ;;  %v1911_v9 = vpack.c.bf16 %v1163_v6, %v1161_v5  ;;  %v1913_v10 = vpack.c.bf16 %v1594_v8, %v1592_v7 }
 0x37d   :  { %1961 = vrot.lane.b32.xlu0 %v1970_v12, %s2129_s21  ;;  %v1775_v14 = vpop.f32.mrb[14].mxu1 }
 0x37e   :  { %v851_v15 = vpop.f32.mrb[15].mxu1 }
 0x37f   :  { %v1975_v16 = vpack.i.bf16 %v1775_v14, %v851_v15  ;;  %v1881_v17 = vpack.c.bf16 %v1775_v14, %v851_v15  ;;  %v1598_v14 = vld [vmem:[%s2476_s7 + $0xb8] sm:$0xff] }
 0x381   :  { %1971 = vrot.lane.b32.xlu0 %v1970_v12, %s2130_s22  ;;  %1966 = vrot.lane.b32.xlu1 %v1975_v16, %s2129_s21  ;;  %v1593_v12 = vld [vmem:[%s2476_s7 + $0x90] sm:$0xff] }
 0x382   :  { %v1915_v15 = vpack.c.bf16 %v1593_v12, %v1591_v11 }
 0x385   :  { %1976 = vrot.lane.b32.xlu1 %v1975_v16, %s2130_s22 }
 0x3ef   :  { %v1962_v18 = vpop.permute.xlu0 %1961 }
 0x3f0   :  { %v1964_v19 = vunpack.i.h.bf16 %v1962_v18  ;;  %v1963_v20 = vunpack.i.l.bf16 %v1962_v18  ;;  %v1597_v18 = vld [vmem:[%s2476_s7 + $0xb0] sm:$0xff] }
 0x3f2   :  { %v1867_v21 = vpack.c.bf16 %v1964_v19, %v1963_v20  ;;  %v1601_v19 = vld [vmem:[%s2476_s7 + $0xc8] sm:$0xff]  ;;  %v1603_v20 = vld [vmem:[%s2476_s7 + $0xd8] sm:$0xff] }
 0x3f3   :  { %v1967_v22 = vpop.permute.xlu1 %1966  ;;  %v1972_v27 = vpop.permute.xlu0 %1971 }
 0x3f4   :  { %v1969_v23 = vunpack.i.h.bf16 %v1967_v22  ;;  %v1968_v24 = vunpack.i.l.bf16 %v1967_v22  ;;  %1868 = vmatprep.subr.bf16.mxu1 %v1867_v21  ;;  %v1974_v30 = vunpack.i.h.bf16 %v1972_v27  ;;  %v1973_v31 = vunpack.i.l.bf16 %v1972_v27 }
 0x3f5   :  { %1870 = vmatpush3.bf16.msra.mxu1 %v1867_v21  ;;  %v1921_v22 = vpack.c.bf16 %v1603_v20, %v1601_v19 }
 0x3f6   :  { %v1871_v26 = vpack.c.bf16 %v1969_v23, %v1968_v24  ;;  %v1887_v33 = vpack.c.bf16 %v1974_v30, %v1973_v31  ;;  %v1600_v23 = vld [vmem:[%s2476_s7 + $0xc0] sm:$0xff]  ;;  %v1602_v24 = vld [vmem:[%s2476_s7 + $0xd0] sm:$0xff] }
 0x3f7   :  { %v1977_v32 = vpop.permute.xlu1 %1976  ;;  %v1923_v27 = vpack.c.bf16 %v1602_v24, %v1600_v23  ;;  %v1604_v30 = vld [vmem:[%s2476_s7 + $0xe0] sm:$0xff]  ;;  %v1606_v31 = vld [vmem:[%s2476_s7 + $0xf0] sm:$0xff] }
 0x3f8   :  { %1873 = vmatprep.subr.msk.bf16.mxu1 %vm2321_vm8, %v1871_v26  ;;  %v1979_v34 = vunpack.i.h.bf16 %v1977_v32  ;;  %v1978_v35 = vunpack.i.l.bf16 %v1977_v32  ;;  %v1927_v32 = vpack.c.bf16 %v1606_v31, %v1604_v30 }
 0x3f9   :  { %1876 = vmatpush3.bf16.msk.msra.mxu1 %vm2321_vm8, %v1871_v26  ;;  %v1607_v26 = vld [vmem:[%s2476_s7 + $0xf8] sm:$0xff] }
 0x3fa   :  { %1878 = vmatprep.subr.bf16.mxu1 %v1877_v13  ;;  %v1891_v38 = vpack.c.bf16 %v1979_v34, %v1978_v35  ;;  %v1494_v34 = vlaneseq }
 0x3fc   :  { %1785 = vmatmul.mubr.msk.f32.vlgmr.msra.gmra.mrb[16].mxu1 %vm880_vm6, %v1568_v28  ;;  %v1495_v35 = vshrl.u32 %v1494_v34, 7 }
 0x3fd   :  { %1880 = vmatpush3.bf16.msra.mxu1 %v1877_v13  ;;  %1795 = vmatprep.mubr.msk.f32.mxu1 %vm880_vm6, %v860_v29  ;;  %v1596_v13 = vld [vmem:[%s2476_s7 + $0xa8] sm:$0xff]  ;;  %v1925_v29 = vpack.c.bf16 %v1607_v26, %v1605_v25 }
 0x3fe   :  { %1883 = vmatprep.subr.msk.bf16.mxu1 %vm2321_vm8, %v1881_v17  ;;  %v1917_v16 = vpack.c.bf16 %v1598_v14, %v1596_v13 }
 0x401   :  { %1886 = vmatpush3.bf16.msk.msra.mxu1 %vm2321_vm8, %v1881_v17  ;;  %v1595_v17 = vld [vmem:[%s2476_s7 + $0xa0] sm:$0xff]  ;;  %s2132_s7 = smov [#allocation11]  }
 0x402   :  { %1888 = vmatprep.subr.bf16.mxu1 %v1887_v33  ;;  %v1919_v21 = vpack.c.bf16 %v1597_v18, %v1595_v17  ;;  %s1524_s13 = sshll.u32 %s2132_s7, 4  ;;  %s1525_s13 = int_to_ptr.vmem [resolvable:$true] %s1524_s13 }
 0x403   :  { %s2090_s8 = scalar_lea.vmem %s1525_s13, 64  ;;  %p2095_p13 = scmp.lt.s32.totalorder %s1525_s13, %s1525_s13 }
 0x404   :  { %1796 = vmatmul.mubr.msk.f32.vlgmr.msra.gmra.mrb[16].mxu1 %vm880_vm6, %v861_v36  ;;  %v1496_v36 = vsub.s32 0, %v1495_v35  ;;  %p2091_p12 = scmp.ne.s32.totalorder %s1525_s13, %s2090_s8  ;;  %p2096_p0 = scmp.lt.s32.totalorder %s2090_s8, %s2090_s8 }
 0x405   :  { %1890 = vmatpush3.bf16.msra.mxu1 %v1887_v33  ;;  %1806 = vmatprep.mubr.msk.f32.mxu1 %vm880_vm6, %v1575_v37  ;;  %v1492_v37 = vld [vmem:[#allocation10] sm:$0x3] }
 0x406   :  { %1893 = vmatprep.subr.msk.bf16.mxu1 %vm2321_vm8, %v1891_v38  ;;  %p2097_p1 = por %p2096_p0, %p2095_p13 }
 0x408   :  { %p2098_p2 = pnand %p2097_p1, %p2091_p12 }
 0x409   :  { %1896 = vmatpush3.bf16.msk.msra.mxu1 %vm2321_vm8, %v1891_v38  ;;  %v1500_v38 = vsub.s32 1, %v1495_v35 }
 0x40b   :  { %v1501_v40 = vrot.slane %v1492_v37, %v1500_v38 }
 0x40c   :  { %1807 = vmatmul.mubr.msk.f32.vlgmr.msra.gmra.mrb[16].mxu1 %vm880_vm6, %v1576_v39  ;;  %v1497_v39 = vrot.slane %v1492_v37, %v1496_v36 }
 0x4df   :  { %v1808_v56 = vpop.f32.mrb[16].mxu1 }
 0x4e0   :  { %v1136_v57 = vpop.f32.mrb[17].mxu1 }
 0x4e1   :  { %v1147_v59 = vmax.f32 %v1136_v57, %v1808_v56 }
 0x4e3   :  { %v1155_v60 = vadd.f32 %v1580_v58, %v1147_v59 }
 0x4e5   :  { %v1156_v1 = vmax.f32 %v1155_v60, 0.0 }
 0x4e7   :  { %v1175_v3 = vrot.slane %v1156_v1, 2  ;;  %v1331_v28 = vrot.slane %v1156_v1, 4  ;;  %v1416_v33 = vrot.slane %v1156_v1, 6 }
 0x4e9   :  { %1589 = vmatmul.mubr.msk.f32.vlgmr.msra.gmra.mrb[4].mxu0 %vm103_vm0, %v1175_v3 }
 0x4ea   :  { %1908 = vmatpush1.bf16.msra.mxu0 %v1907_v2  ;;  %1315 = vmatprep.mubr.f32.mxu0 %v2131_v55 }
 0x4eb   :  { %1910 = vmatprep.subr.bf16.mxu0 %v1909_v4 }
 0x4ee   :  { %1912 = vmatpush1.bf16.msra.mxu0 %v1911_v9 }
 0x4ef   :  { %1914 = vmatprep.subr.bf16.mxu0 %v1913_v10 }
 0x4f1   :  { %1590 = vmatmul.mubr.msk.f32.vlgmr.msra.gmra.mrb[4].mxu0 %vm103_vm0, %v1156_v1 }
 0x4f2   :  { %1916 = vmatpush1.bf16.msra.mxu0 %v1915_v15  ;;  %1398 = vmatprep.mubr.f32.mxu0 %v2131_v55 }
 0x4f3   :  { %1918 = vmatprep.subr.bf16.mxu0 %v1917_v16 }
 0x4f6   :  { %1920 = vmatpush1.bf16.msra.mxu0 %v1919_v21 }
 0x4f7   :  { %1922 = vmatprep.subr.bf16.mxu0 %v1921_v22 }
 0x4f9   :  { %1599 = vmatmul.mubr.msk.f32.vlgmr.msra.gmra.mrb[4].mxu0 %vm103_vm0, %v1331_v28 }
 0x4fa   :  { %1924 = vmatpush1.bf16.msra.mxu0 %v1923_v27  ;;  %1483 = vmatprep.mubr.f32.mxu0 %v2131_v55 }
 0x4fb   :  { %1926 = vmatprep.subr.bf16.mxu0 %v1925_v29 }
 0x4fe   :  { %1928 = vmatpush1.bf16.msra.mxu0 %v1927_v32 }
 0x501   :  { %1608 = vmatmul.mubr.msk.f32.vlgmr.msra.gmra.mrb[4].mxu0 %vm103_vm0, %v1416_v33 }
 0x5d4   :  { %v1485_v41 = vpop.f32.mrb[4].mxu0 }
 0x5d5   :  { %v1504_v42 = vadd.f32 %v1497_v39, %v1485_v41  ;;  %v1487_v43 = vpop.f32.mrb[5].mxu0 }
 0x5d6   :  { %v1505_v44 = vadd.f32 %v1501_v40, %v1487_v43 }
 0x5d8   :  { %v1508_v45 = vcombine.low %v1504_v42, %v1505_v44 }
 0x5da   :  { %1609 = vst.sshfl [vmem:[#allocation11] sm:$0x33 pattern:$0x76325410] %v1508_v45 }
 0x5db   :  { %2101 = shalt.err (!%p2098_p2)
}
 0x5dc   :  { %s2102_s0 = scalar_lea.hbm %s2478_s9, 64 }
 0x5dd   :  { %p2103_p3 = scmp.ne.s32.totalorder %s2478_s9, %s2102_s0  ;;  %p2106_p4 = scmp.lt.u32.totalorder %s2102_s0, %s2478_s9 }
 0x5df   :  { %p2108_p5 = pnand %p2106_p4, %p2103_p3 }
 0x5e1   :  { %2111 = shalt.err (!%p2108_p5)
}
 0x5e2   :  { %1527 = dma.vmem_to_hbm [thread:$0]  %s1525_s13, 64, %s2478_s9, [#allocation4]  }
 0x5e3   :  { %2118 = dma.done.wait [#allocation4], 64  }
 0x5e4   :  { %2119 = vsyncadd [#allocation4], 4294967232 }
 0x5e5   :  { %1531 = vsyncpa [#allocation3], 1 }
 0x5e6   :  { %1532 = vsyncpa [#allocation6], 1 }
 0x5e7   :  { %1533 = vsyncpa [#allocation9], 1 }
 0x5e8   :  { %1534 = vsyncpa [#allocation4], 1 }

</bundles_post_ra>
